<compile_context>
chip_gen: v7x
topology: tpu7x:2x2x1
jax: 0.10.0
libtpu: 0.0.40
codegen_flags: <defaults>
</compile_context>

<pallas_src>
import functools

import jax
import jax.numpy as jnp
from jax import lax
from jax.experimental import pallas as pl
from jax.experimental.pallas import tpu as pltpu


def _im2col(v, K, pad, W):
    """(C, L) -> (K*C, L); row k*C + c holds v[c, j + k - pad], zeroed outside
    each length-W batch segment of the folded lane axis."""
    C, L = v.shape
    if pad > 0:
        zeros = jnp.zeros((C, pad), v.dtype)
        vz = jnp.concatenate([zeros, v, zeros], axis=1)      # (C, L + 2*pad)
    else:
        vz = v
    w_local = lax.broadcasted_iota(jnp.int32, (C, L), 1) % W
    taps = []
    for k in range(K):                                        # static unroll
        s = k - pad
        shifted = vz[:, k:k + L]                              # v shifted by s
        valid = jnp.logical_and(w_local + s >= 0, w_local + s < W)
        taps.append(jnp.where(valid, shifted, 0.0))
    return jnp.concatenate(taps, axis=0)                      # (K*C, L)


def residual_block_kernel(x_ref, wglu_ref, bglu_ref, g1_ref, be1_ref,
                          w2_ref, cb2_ref, g2_ref, be2_ref,
                          segavg_ref, segexp_ref, out_ref,
                          *, W, pad, K1, K2, C_out, eps, mm_dtype):
    x = x_ref[...]                                            # (C_in, L) f32
    seg_avg = segavg_ref[...]                                 # (L, NB)
    seg_exp = segexp_ref[...]                                 # (NB, L)

    def inorm(v, gamma, beta):
        # per-(batch-segment, channel) mean / biased variance over W lanes,
        # computed with two tiny matmuls (stays 2-D / lane-dense).
        mu = jnp.dot(jnp.dot(v, seg_avg, preferred_element_type=jnp.float32),
                     seg_exp, preferred_element_type=jnp.float32)
        c = v - mu
        var = jnp.dot(jnp.dot(c * c, seg_avg,
                              preferred_element_type=jnp.float32),
                      seg_exp, preferred_element_type=jnp.float32)
        return c * lax.rsqrt(var + eps) * gamma + beta

    # --- GatedCNN1d: conv_0 + conv_gate_0 fused into ONE matmul --------------
    im1 = _im2col(x, K1, pad, W).astype(mm_dtype)             # (K1*C_in, L)
    z = jnp.dot(wglu_ref[...], im1,
                preferred_element_type=jnp.float32)           # (2*C_out, L)
    z = z + bglu_ref[...]                                     # conv bias + b_0/c_0
    z = inorm(z, g1_ref[...], be1_ref[...])                   # shared GLU norm
    h = z[:C_out] * jax.nn.sigmoid(z[C_out:])                 # GLU, (C_out, L)

    # --- second Conv1d + InstanceNorm + residual add --------------------------
    im2 = _im2col(h, K2, pad, W).astype(mm_dtype)             # (K2*C_out, L)
    y = jnp.dot(w2_ref[...], im2,
                preferred_element_type=jnp.float32)           # (C_out2, L)
    y = inorm(y + cb2_ref[...], g2_ref[...], be2_ref[...])
    out_ref[...] = (y + x).astype(out_ref.dtype)              # residual from same block


def residual_block(x, p, *, pad, eps=1e-6, matmul_dtype=jnp.bfloat16,
                   block_batch=None):
    """x: (N, C_in, W) float32; p: dict of parameters (PyTorch layouts)."""
    N, C_in, W = x.shape
    C_out, C_in0, K1 = p["w0"].shape
    C_out2, C_outb, K2 = p["w2"].shape
    assert C_in0 == C_in and C_outb == C_out
    assert C_out2 == C_in, "residual add requires out_chs2 == in_chs"
    # TODO(synk): stride != 1 / pixel_shuffle GatedCNN1d paths are not
    # exercised by ResidualBlock (residual add needs W and channels preserved).

    # batch items per grid step: fold enough batch into the lane axis to
    # approach 128 lanes, but keep the parallel grid >= 2 when N allows (v7x).
    nb = block_batch if block_batch is not None else min(N, max(1, 128 // W))
    while N % nb:
        nb -= 1
    L = nb * W

    # fold batch into the lane axis: (N, C, W) -> (C, N*W). This is the ONLY
    # copy of x the kernel DMAs (no padded duplicate, no separate residual).
    x_f = jnp.transpose(x, (1, 0, 2)).reshape(C_in, N * W)

    # pack conv weights as (C_out, K*C_in) (tap-major columns) and fuse the
    # two GLU convs along the output-channel axis; fuse their biases too.
    pack = lambda w: jnp.transpose(w, (0, 2, 1)).reshape(w.shape[0], -1)
    col = lambda v: v.reshape(-1, 1).astype(jnp.float32)
    w_glu = jnp.concatenate([pack(p["w0"]), pack(p["wg"])], 0).astype(matmul_dtype)
    b_glu = jnp.concatenate([p["cb0"] + p["b0"],
                             p["cbg"] + p["c0"]]).reshape(-1, 1)
    g1b = jnp.concatenate([p["g1"], p["g1"]]).reshape(-1, 1)
    be1b = jnp.concatenate([p["be1"], p["be1"]]).reshape(-1, 1)
    w2p = pack(p["w2"]).astype(matmul_dtype)
    cb2c, g2c, be2c = col(p["cb2"]), col(p["g2"]), col(p["be2"])

    # segment-average / segment-expand matrices for per-(n, c) InstanceNorm
    # statistics over the folded lane axis.
    seg = jnp.repeat(jnp.eye(nb, dtype=jnp.float32), W, axis=0)   # (L, nb)
    seg_avg = seg / W
    seg_exp = seg.T

    rep = lambda a: pl.BlockSpec(a.shape, lambda i: (0, 0))
    kern = functools.partial(residual_block_kernel, W=W, pad=pad, K1=K1,
                             K2=K2, C_out=C_out, eps=eps, mm_dtype=matmul_dtype)

    out_f = pl.pallas_call(
        kern,
        out_shape=jax.ShapeDtypeStruct((C_out2, N * W), jnp.float32),
        grid_spec=pltpu.PrefetchScalarGridSpec(
            num_scalar_prefetch=0,
            grid=(N // nb,),
            in_specs=[
                pl.BlockSpec((C_in, L), lambda i: (0, i)),    # folded x
                rep(w_glu), rep(b_glu), rep(g1b), rep(be1b),  # fused GLU params
                rep(w2p), rep(cb2c), rep(g2c), rep(be2c),     # second conv/norm
                rep(seg_avg), rep(seg_exp),                   # segment-stat mats
            ],
            out_specs=pl.BlockSpec((C_out2, L), lambda i: (0, i)),
        ),
        compiler_params=pltpu.CompilerParams(
            dimension_semantics=("parallel",)),
    )(x_f, w_glu, b_glu, g1b, be1b, w2p, cb2c, g2c, be2c, seg_avg, seg_exp)

    # unfold: (C_out2, N*W) -> (N, C_out2, W)
    return jnp.transpose(out_f.reshape(C_out2, N, W), (1, 0, 2))


def reference(x, p, *, pad, eps=1e-6):
    """Pure-JAX f32 reference mirroring the PyTorch forward."""
    dn = ("NCW", "OIW", "NCW")

    def conv(z, w, b):
        y = lax.conv_general_dilated(z, w, window_strides=(1,),
                                     padding=[(pad, pad)], dimension_numbers=dn)
        return y + b[None, :, None]

    def inorm(z, g, bt):
        mu = z.mean(axis=2, keepdims=True)
        var = ((z - mu) ** 2).mean(axis=2, keepdims=True)
        return (z - mu) / jnp.sqrt(var + eps) * g[None, :, None] + bt[None, :, None]

    A = conv(x, p["w0"], p["cb0"]) + p["b0"][None, :, None]
    B = conv(x, p["wg"], p["cbg"]) + p["c0"][None, :, None]
    A = inorm(A, p["g1"], p["be1"])
    B = inorm(B, p["g1"], p["be1"])
    h = A * jax.nn.sigmoid(B)
    out = conv(h, p["w2"], p["cb2"])
    out = inorm(out, p["g2"], p["be2"])
    return out + x


if __name__ == "__main__":
    # ResidualBlock(in_chs=4, out_chs=8, out_chs2=4, kernel1=3, kernel2=3,
    #               stride1=1, stride2=1, padding=1, ins_norm=True)
    N, C_in, W = 2, 4, 16
    C_out, C_out2, K1, K2, pad = 8, 4, 3, 3, 1

    key = jax.random.PRNGKey(0)
    ks = jax.random.split(key, 12)
    params = {
        "w0":  0.2 * jax.random.normal(ks[0], (C_out, C_in, K1), jnp.float32),
        "cb0": 0.1 * jax.random.normal(ks[1], (C_out,), jnp.float32),
        "b0":  jax.random.normal(ks[2], (C_out,), jnp.float32),
        "wg":  0.2 * jax.random.normal(ks[3], (C_out, C_in, K1), jnp.float32),
        "cbg": 0.1 * jax.random.normal(ks[4], (C_out,), jnp.float32),
        "c0":  jax.random.normal(ks[5], (C_out,), jnp.float32),
        "g1":  1.0 + 0.1 * jax.random.normal(ks[6], (C_out,), jnp.float32),
        "be1": 0.1 * jax.random.normal(ks[7], (C_out,), jnp.float32),
        "w2":  0.2 * jax.random.normal(ks[8], (C_out2, C_out, K2), jnp.float32),
        "cb2": 0.1 * jax.random.normal(ks[9], (C_out2,), jnp.float32),
        "g2":  1.0 + 0.1 * jax.random.normal(ks[10], (C_out2,), jnp.float32),
        "be2": 0.1 * jax.random.normal(ks[11], (C_out2,), jnp.float32),
    }
    x = jax.random.normal(jax.random.PRNGKey(42), (N, C_in, W), jnp.float32)

    ref = jax.block_until_ready(reference(x, params, pad=pad))

    # exact-math path (f32 MXU operands): tight parity with the f32 reference
    out_f32 = jax.block_until_ready(
        residual_block(x, params, pad=pad, matmul_dtype=jnp.float32))
    assert out_f32.shape == (N, C_out2, W)
    assert jnp.allclose(out_f32, ref, atol=1e-4, rtol=1e-4), (
        float(jnp.max(jnp.abs(out_f32 - ref))))

    # default fast path: bf16 MXU operands, f32 accumulation + f32 elementwise.
    # Tolerance reflects bf16 operand rounding only (accumulation stays f32).
    out = jax.block_until_ready(residual_block(x, params, pad=pad))
    assert out.shape == (N, C_out2, W)
    assert jnp.allclose(out, ref, atol=5e-2, rtol=5e-2), (
        float(jnp.max(jnp.abs(out - ref))))

    print("KERNEL_OK")
</pallas_src>

<mosaic_0001>
module attributes {stable_mosaic.version = 11 : i64} {
  func.func @residual_block_kernel(%arg0: i32, %arg1: memref<4x32xf32, #tpu.memory_space<vmem>>, %arg2: memref<16x12xf32, #tpu.memory_space<vmem>>, %arg3: memref<16x1xf32, #tpu.memory_space<vmem>>, %arg4: memref<16x1xf32, #tpu.memory_space<vmem>>, %arg5: memref<16x1xf32, #tpu.memory_space<vmem>>, %arg6: memref<4x24xf32, #tpu.memory_space<vmem>>, %arg7: memref<4x1xf32, #tpu.memory_space<vmem>>, %arg8: memref<4x1xf32, #tpu.memory_space<vmem>>, %arg9: memref<4x1xf32, #tpu.memory_space<vmem>>, %arg10: memref<32x2xf32, #tpu.memory_space<vmem>>, %arg11: memref<2x32xf32, #tpu.memory_space<vmem>>, %arg12: memref<4x32xf32, #tpu.memory_space<vmem>>) attributes {dimension_semantics = [#tpu.dimension_semantics<parallel>], iteration_bounds = array<i64: 1>, scalar_prefetch = 0 : i64, scratch_operands = 0 : i64, tpu.core_type = #tpu.core_type<tc>, window_params = [{transform_indices = @transform_0, window_bounds = array<i64: 4, 32>}, {pipeline_mode = #tpu.pipeline_mode<synchronous>, transform_indices = @transform_1, window_bounds = array<i64: 16, 12>}, {pipeline_mode = #tpu.pipeline_mode<synchronous>, transform_indices = @transform_2, window_bounds = array<i64: 16, 1>}, {pipeline_mode = #tpu.pipeline_mode<synchronous>, transform_indices = @transform_3, window_bounds = array<i64: 16, 1>}, {pipeline_mode = #tpu.pipeline_mode<synchronous>, transform_indices = @transform_4, window_bounds = array<i64: 16, 1>}, {pipeline_mode = #tpu.pipeline_mode<synchronous>, transform_indices = @transform_5, window_bounds = array<i64: 4, 24>}, {pipeline_mode = #tpu.pipeline_mode<synchronous>, transform_indices = @transform_6, window_bounds = array<i64: 4, 1>}, {pipeline_mode = #tpu.pipeline_mode<synchronous>, transform_indices = @transform_7, window_bounds = array<i64: 4, 1>}, {pipeline_mode = #tpu.pipeline_mode<synchronous>, transform_indices = @transform_8, window_bounds = array<i64: 4, 1>}, {pipeline_mode = #tpu.pipeline_mode<synchronous>, transform_indices = @transform_9, window_bounds = array<i64: 32, 2>}, {pipeline_mode = #tpu.pipeline_mode<synchronous>, transform_indices = @transform_10, window_bounds = array<i64: 2, 32>}, {transform_indices = @transform_11, window_bounds = array<i64: 4, 32>}]} {
    %c0 = arith.constant 0 : index
    %c0_0 = arith.constant 0 : index
    %0 = vector.load %arg1[%c0, %c0_0] : memref<4x32xf32, #tpu.memory_space<vmem>>, vector<4x32xf32>
    %c0_1 = arith.constant 0 : index
    %c0_2 = arith.constant 0 : index
    %1 = vector.load %arg10[%c0_1, %c0_2] : memref<32x2xf32, #tpu.memory_space<vmem>>, vector<32x2xf32>
    %c0_3 = arith.constant 0 : index
    %c0_4 = arith.constant 0 : index
    %2 = vector.load %arg11[%c0_3, %c0_4] : memref<2x32xf32, #tpu.memory_space<vmem>>, vector<2x32xf32>
    %cst = arith.constant 0.000000e+00 : f32
    %3 = vector.broadcast %cst : f32 to vector<4x1xf32>
    %4 = tpu.concatenate %3, %0, %3 in 1 : vector<4x1xf32>, vector<4x32xf32>, vector<4x1xf32> -> vector<4x34xf32>
    %5 = tpu.iota {dimensions = array<i32: 1>} : vector<4x32xi32>
    %c16_i32 = arith.constant 16 : i32
    %c0_i32 = arith.constant 0 : i32
    %6 = arith.cmpi eq, %c16_i32, %c0_i32 : i32
    %c1_i32 = arith.constant 1 : i32
    %7 = arith.select %6, %c1_i32, %c16_i32 : i32
    %8 = vector.broadcast %7 : i32 to vector<4x32xi32>
    %9 = arith.remsi %5, %8 : vector<4x32xi32>
    %c0_i32_5 = arith.constant 0 : i32
    %10 = vector.broadcast %c0_i32_5 : i32 to vector<4x32xi32>
    %11 = arith.cmpi ne, %9, %10 : vector<4x32xi32>
    %c0_i32_6 = arith.constant 0 : i32
    %12 = vector.broadcast %c0_i32_6 : i32 to vector<4x32xi32>
    %13 = arith.cmpi slt, %9, %12 : vector<4x32xi32>
    %c0_i32_7 = arith.constant 0 : i32
    %14 = arith.cmpi slt, %7, %c0_i32_7 : i32
    %15 = vector.broadcast %14 : i1 to vector<4x32xi1>
    %16 = vector.broadcast %15 : vector<4x32xi1> to vector<4x32xi1>
    %17 = arith.xori %13, %16 : vector<4x32xi1>
    %18 = arith.andi %17, %11 : vector<4x32xi1>
    %19 = vector.broadcast %7 : i32 to vector<4x32xi32>
    %20 = arith.addi %9, %19 : vector<4x32xi32>
    %21 = arith.select %18, %20, %9 : vector<4x32xi1>, vector<4x32xi32>
    %22 = vector.extract_strided_slice %4 {offsets = [0, 0], sizes = [4, 32], strides = [1, 1]} : vector<4x34xf32> to vector<4x32xf32>
    %c-1_i32 = arith.constant -1 : i32
    %23 = vector.broadcast %c-1_i32 : i32 to vector<4x32xi32>
    %24 = arith.addi %21, %23 : vector<4x32xi32>
    %c0_i32_8 = arith.constant 0 : i32
    %25 = vector.broadcast %c0_i32_8 : i32 to vector<4x32xi32>
    %26 = arith.cmpi sge, %24, %25 : vector<4x32xi32>
    %c-1_i32_9 = arith.constant -1 : i32
    %27 = vector.broadcast %c-1_i32_9 : i32 to vector<4x32xi32>
    %28 = arith.addi %21, %27 : vector<4x32xi32>
    %c16_i32_10 = arith.constant 16 : i32
    %29 = vector.broadcast %c16_i32_10 : i32 to vector<4x32xi32>
    %30 = arith.cmpi slt, %28, %29 : vector<4x32xi32>
    %31 = arith.andi %26, %30 : vector<4x32xi1>
    %cst_11 = arith.constant 0.000000e+00 : f32
    %32 = vector.broadcast %cst_11 : f32 to vector<4x32xf32>
    %33 = arith.select %31, %22, %32 : vector<4x32xi1>, vector<4x32xf32>
    %34 = vector.extract_strided_slice %4 {offsets = [0, 1], sizes = [4, 32], strides = [1, 1]} : vector<4x34xf32> to vector<4x32xf32>
    %c0_i32_12 = arith.constant 0 : i32
    %35 = vector.broadcast %c0_i32_12 : i32 to vector<4x32xi32>
    %36 = arith.addi %21, %35 : vector<4x32xi32>
    %c0_i32_13 = arith.constant 0 : i32
    %37 = vector.broadcast %c0_i32_13 : i32 to vector<4x32xi32>
    %38 = arith.cmpi sge, %36, %37 : vector<4x32xi32>
    %c0_i32_14 = arith.constant 0 : i32
    %39 = vector.broadcast %c0_i32_14 : i32 to vector<4x32xi32>
    %40 = arith.addi %21, %39 : vector<4x32xi32>
    %c16_i32_15 = arith.constant 16 : i32
    %41 = vector.broadcast %c16_i32_15 : i32 to vector<4x32xi32>
    %42 = arith.cmpi slt, %40, %41 : vector<4x32xi32>
    %43 = arith.andi %38, %42 : vector<4x32xi1>
    %cst_16 = arith.constant 0.000000e+00 : f32
    %44 = vector.broadcast %cst_16 : f32 to vector<4x32xf32>
    %45 = arith.select %43, %34, %44 : vector<4x32xi1>, vector<4x32xf32>
    %46 = vector.extract_strided_slice %4 {offsets = [0, 2], sizes = [4, 32], strides = [1, 1]} : vector<4x34xf32> to vector<4x32xf32>
    %c1_i32_17 = arith.constant 1 : i32
    %47 = vector.broadcast %c1_i32_17 : i32 to vector<4x32xi32>
    %48 = arith.addi %21, %47 : vector<4x32xi32>
    %c0_i32_18 = arith.constant 0 : i32
    %49 = vector.broadcast %c0_i32_18 : i32 to vector<4x32xi32>
    %50 = arith.cmpi sge, %48, %49 : vector<4x32xi32>
    %c1_i32_19 = arith.constant 1 : i32
    %51 = vector.broadcast %c1_i32_19 : i32 to vector<4x32xi32>
    %52 = arith.addi %21, %51 : vector<4x32xi32>
    %c16_i32_20 = arith.constant 16 : i32
    %53 = vector.broadcast %c16_i32_20 : i32 to vector<4x32xi32>
    %54 = arith.cmpi slt, %52, %53 : vector<4x32xi32>
    %55 = arith.andi %50, %54 : vector<4x32xi1>
    %cst_21 = arith.constant 0.000000e+00 : f32
    %56 = vector.broadcast %cst_21 : f32 to vector<4x32xf32>
    %57 = arith.select %55, %46, %56 : vector<4x32xi1>, vector<4x32xf32>
    %58 = tpu.concatenate %33, %45, %57 in 0 : vector<4x32xf32>, vector<4x32xf32>, vector<4x32xf32> -> vector<12x32xf32>
    %c0_22 = arith.constant 0 : index
    %c0_23 = arith.constant 0 : index
    %59 = vector.load %arg2[%c0_22, %c0_23] : memref<16x12xf32, #tpu.memory_space<vmem>>, vector<16x12xf32>
    %cst_24 = arith.constant dense<0.000000e+00> : vector<16x32xf32>
    %60 = tpu.matmul %59, %58, %cst_24 {dimension_numbers = #tpu.dot_dimension_numbers<[1], [0], [0], [1], [0, 0, 1, 1], [], []>} : vector<16x12xf32>, vector<12x32xf32>, vector<16x32xf32> -> vector<16x32xf32>
    %c0_25 = arith.constant 0 : index
    %c0_26 = arith.constant 0 : index
    %61 = vector.load %arg3[%c0_25, %c0_26] : memref<16x1xf32, #tpu.memory_space<vmem>>, vector<16x1xf32>
    %62 = vector.broadcast %61 : vector<16x1xf32> to vector<16x32xf32>
    %63 = arith.addf %60, %62 : vector<16x32xf32>
    %c0_27 = arith.constant 0 : index
    %c0_28 = arith.constant 0 : index
    %64 = vector.load %arg4[%c0_27, %c0_28] : memref<16x1xf32, #tpu.memory_space<vmem>>, vector<16x1xf32>
    %c0_29 = arith.constant 0 : index
    %c0_30 = arith.constant 0 : index
    %65 = vector.load %arg5[%c0_29, %c0_30] : memref<16x1xf32, #tpu.memory_space<vmem>>, vector<16x1xf32>
    %cst_31 = arith.constant dense<0.000000e+00> : vector<16x2xf32>
    %66 = tpu.matmul %63, %1, %cst_31 {dimension_numbers = #tpu.dot_dimension_numbers<[1], [0], [0], [1], [0, 0, 1, 1], [], []>} : vector<16x32xf32>, vector<32x2xf32>, vector<16x2xf32> -> vector<16x2xf32>
    %cst_32 = arith.constant dense<0.000000e+00> : vector<16x32xf32>
    %67 = tpu.matmul %66, %2, %cst_32 {dimension_numbers = #tpu.dot_dimension_numbers<[1], [0], [0], [1], [0, 0, 1, 1], [], []>} : vector<16x2xf32>, vector<2x32xf32>, vector<16x32xf32> -> vector<16x32xf32>
    %68 = arith.subf %63, %67 : vector<16x32xf32>
    %69 = arith.mulf %68, %68 : vector<16x32xf32>
    %cst_33 = arith.constant dense<0.000000e+00> : vector<16x2xf32>
    %70 = tpu.matmul %69, %1, %cst_33 {dimension_numbers = #tpu.dot_dimension_numbers<[1], [0], [0], [1], [0, 0, 1, 1], [], []>} : vector<16x32xf32>, vector<32x2xf32>, vector<16x2xf32> -> vector<16x2xf32>
    %cst_34 = arith.constant dense<0.000000e+00> : vector<16x32xf32>
    %71 = tpu.matmul %70, %2, %cst_34 {dimension_numbers = #tpu.dot_dimension_numbers<[1], [0], [0], [1], [0, 0, 1, 1], [], []>} : vector<16x2xf32>, vector<2x32xf32>, vector<16x32xf32> -> vector<16x32xf32>
    %cst_35 = arith.constant 9.99999997E-7 : f32
    %72 = vector.broadcast %cst_35 : f32 to vector<16x32xf32>
    %73 = arith.addf %71, %72 : vector<16x32xf32>
    %74 = math.rsqrt %73 : vector<16x32xf32>
    %75 = arith.mulf %68, %74 : vector<16x32xf32>
    %76 = vector.broadcast %64 : vector<16x1xf32> to vector<16x32xf32>
    %77 = arith.mulf %75, %76 : vector<16x32xf32>
    %78 = vector.broadcast %65 : vector<16x1xf32> to vector<16x32xf32>
    %79 = arith.addf %77, %78 : vector<16x32xf32>
    %80 = vector.extract_strided_slice %79 {offsets = [0, 0], sizes = [8, 32], strides = [1, 1]} : vector<16x32xf32> to vector<8x32xf32>
    %81 = vector.extract_strided_slice %79 {offsets = [8, 0], sizes = [8, 32], strides = [1, 1]} : vector<16x32xf32> to vector<8x32xf32>
    %82 = arith.negf %81 : vector<8x32xf32>
    %83 = math.exp %82 : vector<8x32xf32>
    %cst_36 = arith.constant 1.000000e+00 : f32
    %84 = vector.broadcast %cst_36 : f32 to vector<8x32xf32>
    %85 = arith.addf %84, %83 : vector<8x32xf32>
    %86 = arith.divf %84, %85 : vector<8x32xf32>
    %87 = arith.mulf %80, %86 : vector<8x32xf32>
    %cst_37 = arith.constant 0.000000e+00 : f32
    %88 = vector.broadcast %cst_37 : f32 to vector<8x1xf32>
    %89 = tpu.concatenate %88, %87, %88 in 1 : vector<8x1xf32>, vector<8x32xf32>, vector<8x1xf32> -> vector<8x34xf32>
    %90 = tpu.iota {dimensions = array<i32: 1>} : vector<8x32xi32>
    %c16_i32_38 = arith.constant 16 : i32
    %c0_i32_39 = arith.constant 0 : i32
    %91 = arith.cmpi eq, %c16_i32_38, %c0_i32_39 : i32
    %c1_i32_40 = arith.constant 1 : i32
    %92 = arith.select %91, %c1_i32_40, %c16_i32_38 : i32
    %93 = vector.broadcast %92 : i32 to vector<8x32xi32>
    %94 = arith.remsi %90, %93 : vector<8x32xi32>
    %c0_i32_41 = arith.constant 0 : i32
    %95 = vector.broadcast %c0_i32_41 : i32 to vector<8x32xi32>
    %96 = arith.cmpi ne, %94, %95 : vector<8x32xi32>
    %c0_i32_42 = arith.constant 0 : i32
    %97 = vector.broadcast %c0_i32_42 : i32 to vector<8x32xi32>
    %98 = arith.cmpi slt, %94, %97 : vector<8x32xi32>
    %c0_i32_43 = arith.constant 0 : i32
    %99 = arith.cmpi slt, %92, %c0_i32_43 : i32
    %100 = vector.broadcast %99 : i1 to vector<8x32xi1>
    %101 = vector.broadcast %100 : vector<8x32xi1> to vector<8x32xi1>
    %102 = arith.xori %98, %101 : vector<8x32xi1>
    %103 = arith.andi %102, %96 : vector<8x32xi1>
    %104 = vector.broadcast %92 : i32 to vector<8x32xi32>
    %105 = arith.addi %94, %104 : vector<8x32xi32>
    %106 = arith.select %103, %105, %94 : vector<8x32xi1>, vector<8x32xi32>
    %107 = vector.extract_strided_slice %89 {offsets = [0, 0], sizes = [8, 32], strides = [1, 1]} : vector<8x34xf32> to vector<8x32xf32>
    %c-1_i32_44 = arith.constant -1 : i32
    %108 = vector.broadcast %c-1_i32_44 : i32 to vector<8x32xi32>
    %109 = arith.addi %106, %108 : vector<8x32xi32>
    %c0_i32_45 = arith.constant 0 : i32
    %110 = vector.broadcast %c0_i32_45 : i32 to vector<8x32xi32>
    %111 = arith.cmpi sge, %109, %110 : vector<8x32xi32>
    %c-1_i32_46 = arith.constant -1 : i32
    %112 = vector.broadcast %c-1_i32_46 : i32 to vector<8x32xi32>
    %113 = arith.addi %106, %112 : vector<8x32xi32>
    %c16_i32_47 = arith.constant 16 : i32
    %114 = vector.broadcast %c16_i32_47 : i32 to vector<8x32xi32>
    %115 = arith.cmpi slt, %113, %114 : vector<8x32xi32>
    %116 = arith.andi %111, %115 : vector<8x32xi1>
    %cst_48 = arith.constant 0.000000e+00 : f32
    %117 = vector.broadcast %cst_48 : f32 to vector<8x32xf32>
    %118 = arith.select %116, %107, %117 : vector<8x32xi1>, vector<8x32xf32>
    %119 = vector.extract_strided_slice %89 {offsets = [0, 1], sizes = [8, 32], strides = [1, 1]} : vector<8x34xf32> to vector<8x32xf32>
    %c0_i32_49 = arith.constant 0 : i32
    %120 = vector.broadcast %c0_i32_49 : i32 to vector<8x32xi32>
    %121 = arith.addi %106, %120 : vector<8x32xi32>
    %c0_i32_50 = arith.constant 0 : i32
    %122 = vector.broadcast %c0_i32_50 : i32 to vector<8x32xi32>
    %123 = arith.cmpi sge, %121, %122 : vector<8x32xi32>
    %c0_i32_51 = arith.constant 0 : i32
    %124 = vector.broadcast %c0_i32_51 : i32 to vector<8x32xi32>
    %125 = arith.addi %106, %124 : vector<8x32xi32>
    %c16_i32_52 = arith.constant 16 : i32
    %126 = vector.broadcast %c16_i32_52 : i32 to vector<8x32xi32>
    %127 = arith.cmpi slt, %125, %126 : vector<8x32xi32>
    %128 = arith.andi %123, %127 : vector<8x32xi1>
    %cst_53 = arith.constant 0.000000e+00 : f32
    %129 = vector.broadcast %cst_53 : f32 to vector<8x32xf32>
    %130 = arith.select %128, %119, %129 : vector<8x32xi1>, vector<8x32xf32>
    %131 = vector.extract_strided_slice %89 {offsets = [0, 2], sizes = [8, 32], strides = [1, 1]} : vector<8x34xf32> to vector<8x32xf32>
    %c1_i32_54 = arith.constant 1 : i32
    %132 = vector.broadcast %c1_i32_54 : i32 to vector<8x32xi32>
    %133 = arith.addi %106, %132 : vector<8x32xi32>
    %c0_i32_55 = arith.constant 0 : i32
    %134 = vector.broadcast %c0_i32_55 : i32 to vector<8x32xi32>
    %135 = arith.cmpi sge, %133, %134 : vector<8x32xi32>
    %c1_i32_56 = arith.constant 1 : i32
    %136 = vector.broadcast %c1_i32_56 : i32 to vector<8x32xi32>
    %137 = arith.addi %106, %136 : vector<8x32xi32>
    %c16_i32_57 = arith.constant 16 : i32
    %138 = vector.broadcast %c16_i32_57 : i32 to vector<8x32xi32>
    %139 = arith.cmpi slt, %137, %138 : vector<8x32xi32>
    %140 = arith.andi %135, %139 : vector<8x32xi1>
    %cst_58 = arith.constant 0.000000e+00 : f32
    %141 = vector.broadcast %cst_58 : f32 to vector<8x32xf32>
    %142 = arith.select %140, %131, %141 : vector<8x32xi1>, vector<8x32xf32>
    %143 = tpu.concatenate %118, %130, %142 in 0 : vector<8x32xf32>, vector<8x32xf32>, vector<8x32xf32> -> vector<24x32xf32>
    %c0_59 = arith.constant 0 : index
    %c0_60 = arith.constant 0 : index
    %144 = vector.load %arg6[%c0_59, %c0_60] : memref<4x24xf32, #tpu.memory_space<vmem>>, vector<4x24xf32>
    %cst_61 = arith.constant dense<0.000000e+00> : vector<4x32xf32>
    %145 = tpu.matmul %144, %143, %cst_61 {dimension_numbers = #tpu.dot_dimension_numbers<[1], [0], [0], [1], [0, 0, 1, 1], [], []>} : vector<4x24xf32>, vector<24x32xf32>, vector<4x32xf32> -> vector<4x32xf32>
    %c0_62 = arith.constant 0 : index
    %c0_63 = arith.constant 0 : index
    %146 = vector.load %arg7[%c0_62, %c0_63] : memref<4x1xf32, #tpu.memory_space<vmem>>, vector<4x1xf32>
    %147 = vector.broadcast %146 : vector<4x1xf32> to vector<4x32xf32>
    %148 = arith.addf %145, %147 : vector<4x32xf32>
    %c0_64 = arith.constant 0 : index
    %c0_65 = arith.constant 0 : index
    %149 = vector.load %arg8[%c0_64, %c0_65] : memref<4x1xf32, #tpu.memory_space<vmem>>, vector<4x1xf32>
    %c0_66 = arith.constant 0 : index
    %c0_67 = arith.constant 0 : index
    %150 = vector.load %arg9[%c0_66, %c0_67] : memref<4x1xf32, #tpu.memory_space<vmem>>, vector<4x1xf32>
    %cst_68 = arith.constant dense<0.000000e+00> : vector<4x2xf32>
    %151 = tpu.matmul %148, %1, %cst_68 {dimension_numbers = #tpu.dot_dimension_numbers<[1], [0], [0], [1], [0, 0, 1, 1], [], []>} : vector<4x32xf32>, vector<32x2xf32>, vector<4x2xf32> -> vector<4x2xf32>
    %cst_69 = arith.constant dense<0.000000e+00> : vector<4x32xf32>
    %152 = tpu.matmul %151, %2, %cst_69 {dimension_numbers = #tpu.dot_dimension_numbers<[1], [0], [0], [1], [0, 0, 1, 1], [], []>} : vector<4x2xf32>, vector<2x32xf32>, vector<4x32xf32> -> vector<4x32xf32>
    %153 = arith.subf %148, %152 : vector<4x32xf32>
    %154 = arith.mulf %153, %153 : vector<4x32xf32>
    %cst_70 = arith.constant dense<0.000000e+00> : vector<4x2xf32>
    %155 = tpu.matmul %154, %1, %cst_70 {dimension_numbers = #tpu.dot_dimension_numbers<[1], [0], [0], [1], [0, 0, 1, 1], [], []>} : vector<4x32xf32>, vector<32x2xf32>, vector<4x2xf32> -> vector<4x2xf32>
    %cst_71 = arith.constant dense<0.000000e+00> : vector<4x32xf32>
    %156 = tpu.matmul %155, %2, %cst_71 {dimension_numbers = #tpu.dot_dimension_numbers<[1], [0], [0], [1], [0, 0, 1, 1], [], []>} : vector<4x2xf32>, vector<2x32xf32>, vector<4x32xf32> -> vector<4x32xf32>
    %cst_72 = arith.constant 9.99999997E-7 : f32
    %157 = vector.broadcast %cst_72 : f32 to vector<4x32xf32>
    %158 = arith.addf %156, %157 : vector<4x32xf32>
    %159 = math.rsqrt %158 : vector<4x32xf32>
    %160 = arith.mulf %153, %159 : vector<4x32xf32>
    %161 = vector.broadcast %149 : vector<4x1xf32> to vector<4x32xf32>
    %162 = arith.mulf %160, %161 : vector<4x32xf32>
    %163 = vector.broadcast %150 : vector<4x1xf32> to vector<4x32xf32>
    %164 = arith.addf %162, %163 : vector<4x32xf32>
    %165 = arith.addf %164, %0 : vector<4x32xf32>
    %c0_73 = arith.constant 0 : index
    %c0_74 = arith.constant 0 : index
    %166 = vector.load %arg12[%c0_73, %c0_74] : memref<4x32xf32, #tpu.memory_space<vmem>>, vector<4x32xf32>
    tpu.vector_store %arg12[%c0_73, %c0_74], %165 {strides = array<i32>} : memref<4x32xf32, #tpu.memory_space<vmem>>, vector<4x32xf32>,
    return
  }
  func.func @transform_0(%arg0: i32) -> (i32, i32) {
    %c0_i32 = arith.constant 0 : i32
    %c0_i32_0 = arith.constant 0 : i32
    return %c0_i32, %arg0 : i32, i32
  }
  func.func @transform_1(%arg0: i32) -> (i32, i32) {
    %c0_i32 = arith.constant 0 : i32
    %c0_i32_0 = arith.constant 0 : i32
    %c0_i32_1 = arith.constant 0 : i32
    return %c0_i32, %c0_i32_0 : i32, i32
  }
  func.func @transform_2(%arg0: i32) -> (i32, i32) {
    %c0_i32 = arith.constant 0 : i32
    %c0_i32_0 = arith.constant 0 : i32
    %c0_i32_1 = arith.constant 0 : i32
    return %c0_i32, %c0_i32_0 : i32, i32
  }
  func.func @transform_3(%arg0: i32) -> (i32, i32) {
    %c0_i32 = arith.constant 0 : i32
    %c0_i32_0 = arith.constant 0 : i32
    %c0_i32_1 = arith.constant 0 : i32
    return %c0_i32, %c0_i32_0 : i32, i32
  }
  func.func @transform_4(%arg0: i32) -> (i32, i32) {
    %c0_i32 = arith.constant 0 : i32
    %c0_i32_0 = arith.constant 0 : i32
    %c0_i32_1 = arith.constant 0 : i32
    return %c0_i32, %c0_i32_0 : i32, i32
  }
  func.func @transform_5(%arg0: i32) -> (i32, i32) {
    %c0_i32 = arith.constant 0 : i32
    %c0_i32_0 = arith.constant 0 : i32
    %c0_i32_1 = arith.constant 0 : i32
    return %c0_i32, %c0_i32_0 : i32, i32
  }
  func.func @transform_6(%arg0: i32) -> (i32, i32) {
    %c0_i32 = arith.constant 0 : i32
    %c0_i32_0 = arith.constant 0 : i32
    %c0_i32_1 = arith.constant 0 : i32
    return %c0_i32, %c0_i32_0 : i32, i32
  }
  func.func @transform_7(%arg0: i32) -> (i32, i32) {
    %c0_i32 = arith.constant 0 : i32
    %c0_i32_0 = arith.constant 0 : i32
    %c0_i32_1 = arith.constant 0 : i32
    return %c0_i32, %c0_i32_0 : i32, i32
  }
  func.func @transform_8(%arg0: i32) -> (i32, i32) {
    %c0_i32 = arith.constant 0 : i32
    %c0_i32_0 = arith.constant 0 : i32
    %c0_i32_1 = arith.constant 0 : i32
    return %c0_i32, %c0_i32_0 : i32, i32
  }
  func.func @transform_9(%arg0: i32) -> (i32, i32) {
    %c0_i32 = arith.constant 0 : i32
    %c0_i32_0 = arith.constant 0 : i32
    %c0_i32_1 = arith.constant 0 : i32
    return %c0_i32, %c0_i32_0 : i32, i32
  }
  func.func @transform_10(%arg0: i32) -> (i32, i32) {
    %c0_i32 = arith.constant 0 : i32
    %c0_i32_0 = arith.constant 0 : i32
    %c0_i32_1 = arith.constant 0 : i32
    return %c0_i32, %c0_i32_0 : i32, i32
  }
  func.func @transform_11(%arg0: i32) -> (i32, i32) {
    %c0_i32 = arith.constant 0 : i32
    %c0_i32_0 = arith.constant 0 : i32
    return %c0_i32, %arg0 : i32, i32
  }
}

</mosaic_0001>

<bundles_post_ra>
// kernel: tpu_custom_call.1
= control target key start
LH: loop header
LB: loop body
LE: loop exit
PB: predicated region body
PF: predicated region fallthrough
CT: control target
= control target key end

     0   :  { %s1215_s19 = smov 1   ;;  %s1430_s0 = inlined_call_operand.vmem [shape: f32[4,32], index: 0, kind: input, shape index: {}]   ;;  %s1431_s1 = inlined_call_operand.vmem [shape: f32[16,12], index: 1, kind: input, shape index: {}]   ;;  %s1432_s2 = inlined_call_operand.vmem [shape: f32[16,1], index: 2, kind: input, shape index: {}]   ;;  %s1433_s3 = inlined_call_operand.vmem [shape: f32[16,1], index: 3, kind: input, shape index: {}]   ;;  %s1434_s4 = inlined_call_operand.vmem [shape: f32[16,1], index: 4, kind: input, shape index: {}]   ;;  %s1435_s5 = inlined_call_operand.vmem [shape: f32[4,24], index: 5, kind: input, shape index: {}]   ;;  %s1436_s6 = inlined_call_operand.vmem [shape: f32[4,1], index: 6, kind: input, shape index: {}]   ;;  %s1437_s7 = inlined_call_operand.vmem [shape: f32[4,1], index: 7, kind: input, shape index: {}]   ;;  %s1438_s8 = inlined_call_operand.vmem [shape: f32[4,1], index: 8, kind: input, shape index: {}]   ;;  %s1439_s9 = inlined_call_operand.vmem [shape: f32[32,2], index: 9, kind: input, shape index: {}]   ;;  %s1440_s10 = inlined_call_operand.vmem [shape: f32[2,32], index: 10, kind: input, shape index: {}]   ;;  %s1441_s11 = inlined_call_operand.hbm [shape: f32[4,32], index: 11, kind: output, shape index: {}]  }
   0x1   :  { %v1287_v0 = vld [vmem:[%s1430_s0] sm:$0xf] }
   0x2   :  { %46 = vrot.lane.b32.xlu0 %v1287_v0, %s1215_s19 }
   0x3   :  { %16 = vsyncpa [#allocation3], 0  ;;  %v53_v1 = vlaneseq  ;;  %vm1216_vm1 = vmmov 1   ;;  %v93_v6 = vld [vmem:[%s1431_s1] sm:$0xff]  ;;  %vm107_vm3 = vcmask 97280   ;;  %vm49_vm4 = vcmask 7168  }
   0x4   :  { %1056 = vmatprep.mubr.msk.f32.mxu0 %vm107_vm3, %v93_v6  ;;  %vm51_vm5 = vcmask 269312   ;;  %v1217_v8 = vmov 0   ;;  %s1218_s21 = smov 126   ;;  %s1219_s22 = smov 127   ;;  %v95_v11 = vld [vmem:[%s1432_s2] sm:$0xff]  ;;  %v96_v12 = vld [vmem:[%s1432_s2 + $0x8] sm:$0xff] }
   0x5   :  { %v54_v2 = vand.u32 127, %v53_v1  ;;  %1179 = vset.pattern.permute.xlu1 %v1217_v8  ;;  %1180 = vset.pattern.permute.xlu0 %v1217_v8  ;;  %v193_v13 = vld [vmem:[%s1433_s3 + $0x8] sm:$0xff]  ;;  %v192_v14 = vld [vmem:[%s1433_s3] sm:$0xff]  ;;  %vm91_vm7 = vcmask 1043456   ;;  %v42_v29 = vld [vmem:[%s1439_s9 + $0x10] sm:$0xff]  ;;  %vm285_vm9 = vcmask 1041408  }
   0x6   :  { %v40_v15 = vld [vmem:[%s1439_s9] sm:$0xff]  ;;  %v41_v16 = vld [vmem:[%s1439_s9 + $0x8] sm:$0xff]  ;;  %vm1133_vm8 = vmpackc.low %vm91_vm7, %vm1216_vm1  ;;  %vm196_vm10 = vcmask 261120   ;;  %vm278_vm11 = vcmask 15360   ;;  %v1220_v8 = vmov 0.0|0.0   ;;  %vm1221_vm12 = vmmov 0  }
   0x7   :  { %v59_v3 = vand.u32 15, %v54_v2  ;;  %v1323_v17 = vpack.c.bf16 %v41_v16, %v40_v15  ;;  %v195_v18 = vld [vmem:[%s1434_s4 + $0x8] sm:$0xff]  ;;  %v194_v19 = vld [vmem:[%s1434_s4] sm:$0xff]  ;;  %v43_v30 = vld [vmem:[%s1439_s9 + $0x18] sm:$0xff]  ;;  %vm588_vm13 = vcmask 195584   ;;  %vm973_vm14 = vcmask 257024  }
   0x8   :  { %v94_v28 = vld [vmem:[%s1431_s1 + $0x8] sm:$0xff]  ;;  %v1350_v31 = vpack.c.bf16 %v43_v30, %v42_v29  ;;  %v1357_v32 = vld [vmem:[%s1440_s10] sm:$0x3] }
   0x9   :  { %v67_v4 = vadd.s32 4294967295, %v59_v3  ;;  %1139 = vmatprep.subr.bf16.mxu1 %v1323_v17  ;;  %v1333_v20 = vadd.s32 1, %v59_v3  ;;  %v663_v15 = vld [vmem:[%s1438_s8] sm:$0xf] }
   0xa   :  { %1141 = vmatpush3.bf16.msra.mxu1 %v1323_v17 }
   0xb   :  { %vm68_vm0 = vcmp.ge.s32.totalorder %v67_v4, 0  ;;  %vm82_vm6 = vcmp.lt.s32.totalorder %v1333_v20, 16  ;;  %1143 = vmatprep.subr.bf16.mxu1 %v1350_v31 }
   0xc   :  { %vm1293_vm2 = vmpackc.low %vm1216_vm1, %vm68_vm0 }
   0xe   :  { %1145 = vmatpush3.bf16.msra.mxu1 %v1350_v31 }
   0xf   :  { %1086 = vmatprep.subr.msk.mxu1 %vm285_vm9, %v1357_v32 }
  0x74   :  { %v47_v7 = vpop.permute.xlu0 %46 }
  0x75   :  { %v50_v9 = vsel %vm49_vm4, 0.0, %v47_v7 }
  0x76   :  { %v52_v10 = vsel %vm51_vm5, %v50_v9, 0.0  ;;  %v1222_v9 = vmov 0.0  }
  0x77   :  { %84 = vrot.lane.b32.xlu1 %v52_v10, %s1218_s21  ;;  %76 = vrot.lane.b32.xlu0 %v52_v10, %s1219_s22  ;;  %v71_v24 = vsel %vm68_vm0, %v52_v10, 0.0 }
  0x7b   :  { %99 = vperm.xlu1 %1179, %v95_v11   ;;  %104 = vperm.xlu0 %1180, %v96_v12  }
  0x7f   :  { %541 = vperm.xlu1 %1179, %v193_v13   ;;  %536 = vperm.xlu0 %1180, %v192_v14   ;;  %v662_v13 = vld [vmem:[%s1437_s7] sm:$0xf] }
  0x80   :  { %v582_v14 = vld [vmem:[%s1436_s6] sm:$0xf] }
  0x83   :  { %553 = vperm.xlu1 %1179, %v195_v18  }
  0x87   :  { %548 = vperm.xlu1 %1179, %v194_v19   ;;  %v581_v19 = vld [vmem:[%s1435_s5] sm:$0xf]  ;;  %s1223_s5 = smov [#allocation2]  }
  0x88   :  { %s981_s6 = sshll.u32 %s1223_s5, 4  ;;  %s982_s6 = int_to_ptr.vmem [resolvable:$true] %s981_s6 }
  0x89   :  { %s1191_s7 = scalar_lea.vmem %s982_s6, 64  ;;  %p1196_p1 = scmp.lt.s32.totalorder %s982_s6, %s982_s6 }
  0x8a   :  { %p1192_p0 = scmp.ne.s32.totalorder %s982_s6, %s1191_s7  ;;  %p1197_p2 = scmp.lt.s32.totalorder %s1191_s7, %s1191_s7 }
  0x8c   :  { %p1198_p3 = por %p1197_p2, %p1196_p1 }
  0x8e   :  { %p1199_p4 = pnand %p1198_p3, %p1192_p0 }
  0xe9   :  { %v85_v21 = vpop.permute.xlu1 %84  ;;  %v77_v22 = vpop.permute.xlu0 %76 }
  0xea   :  { %v89_v23 = vrot.slane %v77_v22, 4  ;;  %v87_v25 = vsel %vm82_vm6, %v85_v21, 0.0 }
  0xec   :  { %v92_v26 = vsel %vm91_vm7, %v71_v24, %v89_v23 }
  0xed   :  { %v1132_v27 = vpack.c.bf16 %v87_v25, %v92_v26 }
  0xef   :  { %1134 = vmatprep.subr.msk.bf16.mxu0 %vm1133_vm8, %v1132_v27 }
  0xf0   :  { %1137 = vmatpush3.bf16.msk.msra.mxu0 %vm1133_vm8, %v1132_v27 }
  0xf1   :  { %1070 = vmatprep.subr.msk.mxu0 %vm285_vm9, %v1357_v32 }
  0xf3   :  { %1057 = vmatmul.mubr.msk.f32.vlgmr.msra.gmra.mrb[0].mxu0 %vm107_vm3, %v94_v28 }
  0xf4   :  { %1071 = vmatpush3.msk.msra.mxu0 %vm285_vm9, %v1357_v32 }
  0xf5   :  { %1147 = vmatprep.subr.bf16.mxu0 %v1323_v17 }
  0xfa   :  { %v100_v34 = vpop.permute.xlu1 %99  ;;  %v105_v36 = vpop.permute.xlu0 %104 }
  0xfe   :  { %v542_v52 = vpop.permute.xlu1 %541  ;;  %v537_v1 = vpop.permute.xlu0 %536 }
 0x102   :  { %v554_v56 = vpop.permute.xlu1 %553 }
 0x106   :  { %v549_v3 = vpop.permute.xlu1 %548 }
 0x1c6   :  { %v1058_v33 = vpop.f32.mrb[0].mxu0 }
 0x1c7   :  { %v183_v35 = vpop.f32.mrb[1].mxu0  ;;  %v189_v38 = vadd.f32 %v1058_v33, %v105_v36 }
 0x1c8   :  { %v184_v37 = vadd.f32 %v183_v35, %v100_v34 }
 0x1ca   :  { %1067 = vmatprep.mubr.msk.f32.mxu1 %vm196_vm10, %v184_v37 }
 0x1cb   :  { %1068 = vmatmul.mubr.msk.f32.vlgmr.msra.gmra.mrb[0].mxu1 %vm196_vm10, %v189_v38 }
 0x1cc   :  { %1087 = vmatpush3.msk.msra.mxu1 %vm285_vm9, %v1357_v32 }
 0x1cd   :  { %1154 = vmatprep.subr.bf16.mxu1 %v1220_v8 }
 0x29e   :  { %v1069_v39 = vpop.f32.mrb[0].mxu1 }
 0x29f   :  { %v269_v40 = vpop.f32.mrb[1].mxu1 }
 0x2a0   :  { %1072 = vmatprep.mubr.msk.f32.mxu0 %vm278_vm11, %v269_v40 }
 0x2a1   :  { %1073 = vmatmul.mubr.msk.f32.vlgmr.msra.gmra.mrb[2].mxu0 %vm278_vm11, %v1069_v39 }
 0x2a2   :  { %1149 = vmatpush3.bf16.msra.mxu0 %v1323_v17 }
 0x2a3   :  { %1151 = vmatprep.subr.bf16.mxu0 %v1350_v31 }
 0x2a6   :  { %1153 = vmatpush3.bf16.msra.mxu0 %v1350_v31 }
 0x2a7   :  { %1158 = vmatprep.subr.bf16.mxu0 %v1220_v8 }
 0x374   :  { %v1074_v41 = vpop.f32.mrb[2].mxu0 }
 0x375   :  { %v365_v42 = vsub.f32 %v189_v38, %v1074_v41  ;;  %v355_v43 = vpop.f32.mrb[3].mxu0 }
 0x376   :  { %v364_v44 = vsub.f32 %v184_v37, %v355_v43 }
 0x377   :  { %v367_v46 = vmul.f32 %v365_v42, %v365_v42 }
 0x378   :  { %v366_v45 = vmul.f32 %v364_v44, %v364_v44 }
 0x37a   :  { %1083 = vmatprep.mubr.msk.f32.mxu0 %vm196_vm10, %v366_v45 }
 0x37b   :  { %1084 = vmatmul.mubr.msk.f32.vlgmr.msra.gmra.mrb[4].mxu0 %vm196_vm10, %v367_v46 }
 0x37c   :  { %1160 = vmatpush3.bf16.msra.mxu0 %v1323_v17  ;;  %1108 = vmatprep.mubr.msk.f32.mxu0 %vm1221_vm12, %v1222_v9 }
 0x37d   :  { %1161 = vmatprep.subr.bf16.mxu0 %v1220_v8 }
 0x380   :  { %1163 = vmatpush3.bf16.msra.mxu0 %v1350_v31 }
 0x381   :  { %1127 = vmatprep.subr.mxu0 %v1222_v9 }
 0x44e   :  { %v1085_v47 = vpop.f32.mrb[4].mxu0 }
 0x44f   :  { %v440_v48 = vpop.f32.mrb[5].mxu0 }
 0x450   :  { %1088 = vmatprep.mubr.msk.f32.mxu1 %vm278_vm11, %v440_v48 }
 0x451   :  { %1089 = vmatmul.mubr.msk.f32.vlgmr.msra.gmra.mrb[2].mxu1 %vm278_vm11, %v1085_v47 }
 0x452   :  { %1097 = vmatprep.mubr.msk.f32.mxu1 %vm1221_vm12, %v1222_v9 }
 0x524   :  { %v1090_v49 = vpop.f32.mrb[2].mxu1 }
 0x525   :  { %v527_v50 = vadd.f32 1e-06, %v1090_v49  ;;  %v521_v51 = vpop.f32.mrb[3].mxu1 }
 0x526   :  { %v522_v58 = vadd.f32 1e-06, %v521_v51 }
 0x527   :  { %1181 = vrsqrt.f32 %v527_v50 }
 0x531   :  { %v1182_v53 = vpop.eup %1181 }
 0x532   :  { %v533_v54 = vmul.f32 %v1182_v53, %v365_v42 }
 0x534   :  { %v545_v55 = vmul.f32 %v542_v52, %v533_v54 }
 0x536   :  { %v557_v57 = vadd.f32 %v554_v56, %v545_v55 }
 0x538   :  { %v1002_v59 = vmul.f32 -1.442695, %v557_v57 }
 0x53a   :  { %1183 = vpow2.f32 %v1002_v59 }
 0x53b   :  { %1185 = vrsqrt.f32 %v522_v58 }
 0x544   :  { %v1184_v60 = vpop.eup %1183 }
 0x545   :  { %v1186_v61 = vpop.eup %1185  ;;  %v561_v62 = vadd.f32 1.0, %v1184_v60 }
 0x546   :  { %v532_v63 = vmul.f32 %v1186_v61, %v364_v44 }
 0x547   :  { %1187 = vrcp.f32 %v561_v62 }
 0x548   :  { %v544_v2 = vmul.f32 %v537_v1, %v532_v63 }
 0x54a   :  { %v556_v4 = vadd.f32 %v549_v3, %v544_v2 }
 0x551   :  { %v1188_v6 = vpop.eup %1187 }
 0x552   :  { %v564_v7 = vmul.f32 %v1188_v6, %v556_v4 }
 0x554   :  { %566 = vrot.lane.b32.xlu0 %v564_v7, %s1215_s19 }
 0x5c6   :  { %v567_v10 = vpop.permute.xlu0 %566 }
 0x5c7   :  { %v569_v11 = vsel %vm49_vm4, 0.0, %v567_v10 }
 0x5c8   :  { %v570_v12 = vsel %vm51_vm5, %v569_v11, 0.0 }
 0x5c9   :  { %577 = vrot.lane.b32.xlu0 %v570_v12, %s1218_s21  ;;  %573 = vrot.lane.b32.xlu1 %v570_v12, %s1219_s22 }
 0x5cd   :  { %962 = vperm.xlu0 %1180, %v662_v13   ;;  %585 = vperm.xlu1 %1179, %v582_v14  }
 0x5d1   :  { %968 = vperm.xlu1 %1179, %v663_v15  }
 0x63b   :  { %v574_v16 = vpop.permute.xlu1 %573  ;;  %v578_v21 = vpop.permute.xlu0 %577 }
 0x63c   :  { %v1155_v18 = vpack.c.bf16 %v574_v16, %v570_v12 }
 0x63e   :  { %1157 = vmatpush3.bf16.msk.msra.mxu1 %vm1293_vm2, %v1155_v18 }
 0x63f   :  { %1095 = vmatprep.subr.mxu1 %v1222_v9 }
 0x642   :  { %1096 = vmatpush3.msk.msra.mxu1 %vm82_vm6, %v578_v21 }
 0x643   :  { %1098 = vmatmul.mubr.msk.f32.vlgmr.msra.gmra.mrb[4].mxu1 %vm588_vm13, %v581_v19  ;;  %1111 = vmatprep.subr.mxu1 %v1222_v9 }
 0x644   :  { %1112 = vmatpush3.msk.msra.mxu1 %vm285_vm9, %v1357_v32  ;;  %1113 = vmatprep.mubr.msk.f32.mxu1 %vm1221_vm12, %v1222_v9 }
 0x645   :  { %1164 = vmatprep.subr.bf16.mxu1 %v1220_v8 }
 0x64c   :  { %v586_v5 = vpop.permute.xlu1 %585  ;;  %v963_v37 = vpop.permute.xlu0 %962 }
 0x650   :  { %v969_v39 = vpop.permute.xlu1 %968 }
 0x716   :  { %v658_v22 = vpop.f32.mrb[4].mxu1 }
 0x717   :  { %v659_v23 = vadd.f32 %v658_v22, %v586_v5  ;;  %v1099_v24 = vpop.f32.mrb[5].mxu1 }
 0x719   :  { %1109 = vmatmul.mubr.msk.f32.vlgmr.msra.gmra.mrb[6].mxu0 %vm196_vm10, %v659_v23 }
 0x71a   :  { %1128 = vmatpush3.msk.msra.mxu0 %vm285_vm9, %v1357_v32  ;;  %1129 = vmatprep.mubr.msk.f32.mxu0 %vm1221_vm12, %v1222_v9 }
 0x7ec   :  { %v733_v20 = vpop.f32.mrb[6].mxu0 }
 0x7ed   :  { %v1110_v25 = vpop.f32.mrb[7].mxu0  ;;  %1114 = vmatmul.mubr.msk.f32.vlgmr.msra.gmra.mrb[6].mxu1 %vm278_vm11, %v733_v20 }
 0x7ee   :  { %1166 = vmatpush3.bf16.msra.mxu1 %v1323_v17  ;;  %1124 = vmatprep.mubr.msk.f32.mxu1 %vm1221_vm12, %v1222_v9 }
 0x7ef   :  { %1167 = vmatprep.subr.bf16.mxu1 %v1220_v8 }
 0x7f2   :  { %1169 = vmatpush3.bf16.msra.mxu1 %v1350_v31 }
 0x8c0   :  { %v806_v26 = vpop.f32.mrb[6].mxu1 }
 0x8c1   :  { %v810_v27 = vsub.f32 %v659_v23, %v806_v26  ;;  %v1115_v28 = vpop.f32.mrb[7].mxu1 }
 0x8c3   :  { %v811_v29 = vmul.f32 %v810_v27, %v810_v27 }
 0x8c5   :  { %1125 = vmatmul.mubr.msk.f32.vlgmr.msra.gmra.mrb[8].mxu1 %vm196_vm10, %v811_v29 }
 0x998   :  { %v881_v30 = vpop.f32.mrb[8].mxu1 }
 0x999   :  { %v1126_v32 = vpop.f32.mrb[9].mxu1  ;;  %1130 = vmatmul.mubr.msk.f32.vlgmr.msra.gmra.mrb[8].mxu0 %vm278_vm11, %v881_v30 }
 0xa6c   :  { %v954_v33 = vpop.f32.mrb[8].mxu0 }
 0xa6d   :  { %v955_v34 = vadd.f32 1e-06, %v954_v33  ;;  %v1131_v35 = vpop.f32.mrb[9].mxu0 }
 0xa6f   :  { %1189 = vrsqrt.f32 %v955_v34 }
 0xa79   :  { %v1190_v17 = vpop.eup %1189 }
 0xa7a   :  { %v959_v36 = vmul.f32 %v1190_v17, %v810_v27 }
 0xa7c   :  { %v965_v38 = vmul.f32 %v963_v37, %v959_v36 }
 0xa7e   :  { %v971_v31 = vadd.f32 %v969_v39, %v965_v38 }
 0xa80   :  { %v972_v40 = vadd.f32 %v971_v31, %v1287_v0 }
 0xa82   :  { %974 = vst.msk [vmem:[#allocation2] sm:$0xf] %vm973_vm14, %v972_v40 }
 0xa83   :  { %1202 = shalt.err (!%p1199_p4)
}
 0xa84   :  { %s1203_s30 = scalar_lea.hbm %s1441_s11, 64 }
 0xa85   :  { %p1204_p5 = scmp.ne.s32.totalorder %s1441_s11, %s1203_s30  ;;  %p1207_p6 = scmp.lt.u32.totalorder %s1203_s30, %s1441_s11 }
 0xa87   :  { %p1209_p7 = pnand %p1207_p6, %p1204_p5 }
 0xa89   :  { %1212 = shalt.err (!%p1209_p7)
}
 0xa8a   :  { %984 = dma.vmem_to_hbm [thread:$0]  %s982_s6, 64, %s1441_s11, [#allocation3]  }
 0xa8b   :  { %1213 = dma.done.wait [#allocation3], 64  }
 0xa8c   :  { %1214 = vsyncadd [#allocation3], 4294967232 }
 0xa8d   :  { %988 = vsyncpa [#allocation3], 1 }

</bundles_post_ra>
